<compile_context>
chip_gen: v5e
topology: v5e:2x2
jax: 0.10.0
libtpu: 0.0.40
codegen_flags: <defaults>
</compile_context>

<pallas_src>
import functools

import jax
import jax.numpy as jnp
from jax import lax
from jax.experimental import pallas as pl
from jax.experimental.pallas import tpu as pltpu

IGNORE_INDEX = -100
_LANE = 128


def _ocel_kernel(logits_ref, target_ref, sum_ref, cnt_ref, sum_acc, cnt_acc, *,
                 ignore_index, total_rows, inner_steps):
    """Grid = (batch, outer, inner).

    logits_ref : (1, C, TR, 128) block -- classes are leading planes.
    target_ref : (1, TR, 128) integer block (native dtype, cast in-kernel).
    sum_ref / cnt_ref : (1, 1, 1, 1) per-(batch, outer) outputs, resident
                        across the inner axis; written on the last inner step.
    sum_acc / cnt_acc : (TR, 128) lane-dense VMEM accumulators.
    """
    i = pl.program_id(2)

    @pl.when(i == 0)
    def _():
        sum_acc[...] = jnp.zeros_like(sum_acc)
        cnt_acc[...] = jnp.zeros_like(cnt_acc)

    num_classes = logits_ref.shape[1]
    tr = logits_ref.shape[2]

    t = target_ref[0].astype(jnp.int32)                      # (TR, 128)

    def plane(c):
        # Static slice -> zero-cost ref view, load, in-register cast.
        return logits_ref[0, c].astype(jnp.float32)          # (TR, 128)

    # Pass 1: per-position max over classes (per-plane VALU maximum).
    m = plane(0)
    for c in range(1, num_classes):
        m = jnp.maximum(m, plane(c))

    # Pass 2: sum of exp, picked logit, argmax (first occurrence = lowest id).
    # TODO(synk): very large class counts would need class-axis tiling
    # (online softmax); this unrolled per-plane loop assumes small static C.
    sum_exp = jnp.zeros_like(m)
    logit_t = jnp.zeros_like(m)
    argmax = jnp.full(m.shape, num_classes, dtype=jnp.int32)
    for c in range(num_classes):
        xc = plane(c)
        sum_exp = sum_exp + jnp.exp(xc - m)
        logit_t = logit_t + jnp.where(t == c, xc, 0.0)
        argmax = jnp.where((xc == m) & (argmax == num_classes),
                           jnp.int32(c), argmax)

    ce = m + jnp.log(sum_exp) - logit_t                       # (TR, 128)

    # Masking: ignore_index plus (statically, only if the last tile overhangs)
    # the ragged row tail of this (batch, outer) slab.
    valid = t != ignore_index
    if total_rows % tr != 0:
        tile = pl.program_id(1) * inner_steps + i
        row = tile * tr + lax.broadcasted_iota(jnp.int32, t.shape, 0)
        valid = valid & (row < total_rows)

    w = (jnp.abs(argmax - t) + 1).astype(jnp.float32)
    # NaN isolation: garbage/ignored positions must be dropped via where()
    # (do NOT reorder into `ce * w * mask`).
    contrib = jnp.where(valid, ce * w, 0.0)

    sum_acc[...] += contrib
    cnt_acc[...] += valid.astype(jnp.float32)

    @pl.when(i == pl.num_programs(2) - 1)
    def _():
        sum_ref[...] = jnp.sum(sum_acc[...]).reshape(1, 1, 1, 1)
        cnt_ref[...] = jnp.sum(cnt_acc[...]).reshape(1, 1, 1, 1)


def ordered_cross_entropy_loss(output, target, ignore_index=IGNORE_INDEX):
    """output: (N, C, *spatial) float logits; target: (N, *spatial) int labels."""
    n, num_classes = output.shape[0], output.shape[1]
    s = 1
    for d in output.shape[2:]:
        s *= d
    s = max(int(s), 1)

    logits = output.reshape(n, num_classes, s)
    tgt = target.reshape(n, s)  # keep native integer dtype (no HBM cast pass)

    # Pad a ragged spatial tail up to a lane multiple.  For the usual case
    # (S % 128 == 0) this branch is skipped and everything stays a free
    # metadata reshape with zero extra HBM traffic.
    pad = (-s) % _LANE
    if pad:
        # TODO(synk): this fallback costs one HBM copy of logits+targets; a
        # 3-D lane-dense kernel variant would avoid it for ragged shapes.
        logits = jnp.pad(logits, ((0, 0), (0, 0), (0, pad)))
        tgt = jnp.pad(tgt, ((0, 0), (0, pad)), constant_values=ignore_index)
    s_pad = s + pad
    r_total = s_pad // _LANE

    # Lane-dense 4-D layout: classes as leading planes, spatial as (rows, 128).
    logits = logits.reshape(n, num_classes, r_total, _LANE)
    tgt = tgt.reshape(n, r_total, _LANE)

    # ---- tile sizing with explicit VMEM accounting --------------------------
    lg_item = jnp.dtype(output.dtype).itemsize
    tg_item = max(jnp.dtype(tgt.dtype).itemsize, 1)
    try:
        vmem_capacity = int(pltpu.get_tpu_info().vmem_capacity_bytes)
    except Exception:
        vmem_capacity = 64 << 20  # conservative: assume v7x-sized VMEM
    # Never claim the full physical VMEM: leave headroom for Mosaic scratch.
    vmem_limit = min(max(vmem_capacity - (16 << 20), 32 << 20), 100 << 20)

    n_tmp = 10  # ~number of (TR,128) f32 temporaries live in the kernel body
    bytes_per_row = (2 * num_classes * _LANE * lg_item   # logits block, 2 bufs
                     + 2 * _LANE * tg_item               # target block, 2 bufs
                     + 2 * _LANE * 4                     # sum/cnt accumulators
                     + n_tmp * _LANE * 4)                # compiler temporaries
    working_budget = vmem_limit - (4 << 20)
    tr_vmem = working_budget // bytes_per_row
    # ~8 MiB of logits per tile amortizes the ~0.35 us per-grid-step overhead
    # (85%+ of HBM roofline regime) on all of v5e/v6e/v7x.
    tr_budget = (8 << 20) // max(num_classes * _LANE * lg_item, 1)
    tr = int(min(tr_vmem, tr_budget))
    tr = max(8, (tr // 8) * 8)
    if tr >= r_total:
        tr = r_total  # single row-tile; full-extent block is always legal

    num_tiles = int(pl.cdiv(r_total, tr))
    # Megacore (v7x, 2 TCs): if the batch alone would leave a core idle or
    # imbalanced, split the spatial tiles into a second parallel axis.
    outer = 2 if (n % 2 == 1 and num_tiles % 2 == 0) else 1
    inner = num_tiles // outer

    grid = (n, outer, inner)

    kernel = functools.partial(_ocel_kernel, ignore_index=ignore_index,
                               total_rows=r_total, inner_steps=inner)

    partial_sum, partial_cnt = pl.pallas_call(
        kernel,
        out_shape=(
            jax.ShapeDtypeStruct((n, outer, 1, 1), jnp.float32),
            jax.ShapeDtypeStruct((n, outer, 1, 1), jnp.float32),
        ),
        grid_spec=pltpu.PrefetchScalarGridSpec(
            num_scalar_prefetch=0,
            grid=grid,
            in_specs=[
                pl.BlockSpec((1, num_classes, tr, _LANE),
                             lambda b, o, i: (b, 0, o * inner + i, 0)),
                pl.BlockSpec((1, tr, _LANE),
                             lambda b, o, i: (b, o * inner + i, 0)),
            ],
            out_specs=(
                pl.BlockSpec((1, 1, 1, 1), lambda b, o, i: (b, o, 0, 0)),
                pl.BlockSpec((1, 1, 1, 1), lambda b, o, i: (b, o, 0, 0)),
            ),
            scratch_shapes=[
                pltpu.VMEM((tr, _LANE), jnp.float32),
                pltpu.VMEM((tr, _LANE), jnp.float32),
            ],
        ),
        compiler_params=pltpu.CompilerParams(
            dimension_semantics=("parallel", "parallel", "arbitrary"),
            vmem_limit_bytes=int(vmem_limit),
        ),
    )(logits, tgt)

    # Final mean over valid elements (NaN if none, matching torch mean of empty).
    return (jnp.sum(partial_sum) / jnp.sum(partial_cnt)).astype(jnp.float32)


def _reference_loss(output, target, ignore_index=IGNORE_INDEX):
    """Pure-JAX reference of the PyTorch forward, for verification."""
    num_classes = output.shape[1]
    x = jnp.moveaxis(output, 1, -1).reshape(-1, num_classes).astype(jnp.float32)
    t = target.reshape(-1).astype(jnp.int32)
    lse = jax.scipy.special.logsumexp(x, axis=-1)
    safe_t = jnp.clip(t, 0, num_classes - 1)
    logit_t = jnp.take_along_axis(x, safe_t[:, None], axis=-1)[:, 0]
    ce = lse - logit_t
    pred = jnp.argmax(x, axis=-1).astype(jnp.int32)
    valid = t != ignore_index
    w = (jnp.abs(pred - t) + 1).astype(jnp.float32)
    num = jnp.sum(jnp.where(valid, ce * w, 0.0))
    den = jnp.sum(valid.astype(jnp.float32))
    return num / den


if __name__ == "__main__":
    key = jax.random.PRNGKey(0)
    k_logits, k_tgt, k_mask = jax.random.split(key, 3)

    N, C, H, W = 2, 4, 16, 16
    logits = jax.random.normal(k_logits, (N, C, H, W), dtype=jnp.float32)
    target = jax.random.randint(k_tgt, (N, H, W), 0, C, dtype=jnp.int32)
    # Sprinkle some ignore_index entries.
    drop = jax.random.bernoulli(k_mask, p=0.2, shape=(N, H, W))
    target = jnp.where(drop, jnp.int32(IGNORE_INDEX), target)

    loss = jax.block_until_ready(ordered_cross_entropy_loss(logits, target))
    ref = jax.block_until_ready(_reference_loss(logits, target))
    assert jnp.allclose(loss, ref, rtol=1e-5, atol=1e-5), (loss, ref)

    print("KERNEL_OK")
</pallas_src>

<mosaic_0001>
module attributes {stable_mosaic.version = 11 : i64} {
  func.func @_ocel_kernel(%arg0: i32, %arg1: i32, %arg2: i32, %arg3: memref<1x4x2x128xf32, #tpu.memory_space<vmem>>, %arg4: memref<1x2x128xi32, #tpu.memory_space<vmem>>, %arg5: memref<1x1x1x1xf32, #tpu.memory_space<vmem>>, %arg6: memref<1x1x1x1xf32, #tpu.memory_space<vmem>>, %arg7: memref<2x128xf32, #tpu.memory_space<vmem>>, %arg8: memref<2x128xf32, #tpu.memory_space<vmem>>) attributes {dimension_semantics = [#tpu.dimension_semantics<parallel>, #tpu.dimension_semantics<parallel>, #tpu.dimension_semantics<arbitrary>], iteration_bounds = array<i64: 2, 1, 1>, scalar_prefetch = 0 : i64, scratch_operands = 2 : i64, tpu.core_type = #tpu.core_type<tc>, window_params = [{transform_indices = @transform_0, window_bounds = array<i64: 1, 4, 2, 128>}, {transform_indices = @transform_1, window_bounds = array<i64: 1, 2, 128>}, {transform_indices = @transform_2, window_bounds = array<i64: 1, 1, 1, 1>}, {transform_indices = @transform_3, window_bounds = array<i64: 1, 1, 1, 1>}]} {
    %c0_i32 = arith.constant 0 : i32
    %0 = arith.cmpi eq, %arg2, %c0_i32 : i32
    %1 = arith.extui %0 : i1 to i32
    %c0_i32_0 = arith.constant 0 : i32
    %2 = arith.cmpi ne, %1, %c0_i32_0 : i32
    scf.if %2 {
      %cst_58 = arith.constant 0.000000e+00 : f32
      %107 = vector.broadcast %cst_58 : f32 to vector<2x128xf32>
      %c0_59 = arith.constant 0 : index
      %c0_60 = arith.constant 0 : index
      %108 = vector.load %arg7[%c0_59, %c0_60] : memref<2x128xf32, #tpu.memory_space<vmem>>, vector<2x128xf32>
      tpu.vector_store %arg7[%c0_59, %c0_60], %107 {strides = array<i32>} : memref<2x128xf32, #tpu.memory_space<vmem>>, vector<2x128xf32>,
      %cst_61 = arith.constant 0.000000e+00 : f32
      %109 = vector.broadcast %cst_61 : f32 to vector<2x128xf32>
      %c0_62 = arith.constant 0 : index
      %c0_63 = arith.constant 0 : index
      %110 = vector.load %arg8[%c0_62, %c0_63] : memref<2x128xf32, #tpu.memory_space<vmem>>, vector<2x128xf32>
      tpu.vector_store %arg8[%c0_62, %c0_63], %109 {strides = array<i32>} : memref<2x128xf32, #tpu.memory_space<vmem>>, vector<2x128xf32>,
    } else {
    }
    %c0 = arith.constant 0 : index
    %c0_1 = arith.constant 0 : index
    %c0_2 = arith.constant 0 : index
    %3 = vector.load %arg4[%c0, %c0_1, %c0_2] : memref<1x2x128xi32, #tpu.memory_space<vmem>>, vector<1x2x128xi32>
    %4 = vector.shape_cast %3 : vector<1x2x128xi32> to vector<2x128xi32>
    %c0_3 = arith.constant 0 : index
    %c0_4 = arith.constant 0 : index
    %c0_5 = arith.constant 0 : index
    %c0_6 = arith.constant 0 : index
    %5 = vector.load %arg3[%c0_3, %c0_4, %c0_5, %c0_6] : memref<1x4x2x128xf32, #tpu.memory_space<vmem>>, vector<1x1x2x128xf32>
    %6 = vector.shape_cast %5 : vector<1x1x2x128xf32> to vector<2x128xf32>
    %c0_7 = arith.constant 0 : index
    %c1 = arith.constant 1 : index
    %c0_8 = arith.constant 0 : index
    %c0_9 = arith.constant 0 : index
    %7 = vector.load %arg3[%c0_7, %c1, %c0_8, %c0_9] : memref<1x4x2x128xf32, #tpu.memory_space<vmem>>, vector<1x1x2x128xf32>
    %8 = vector.shape_cast %7 : vector<1x1x2x128xf32> to vector<2x128xf32>
    %9 = arith.maximumf %6, %8 : vector<2x128xf32>
    %c0_10 = arith.constant 0 : index
    %c2 = arith.constant 2 : index
    %c0_11 = arith.constant 0 : index
    %c0_12 = arith.constant 0 : index
    %10 = vector.load %arg3[%c0_10, %c2, %c0_11, %c0_12] : memref<1x4x2x128xf32, #tpu.memory_space<vmem>>, vector<1x1x2x128xf32>
    %11 = vector.shape_cast %10 : vector<1x1x2x128xf32> to vector<2x128xf32>
    %12 = arith.maximumf %9, %11 : vector<2x128xf32>
    %c0_13 = arith.constant 0 : index
    %c3 = arith.constant 3 : index
    %c0_14 = arith.constant 0 : index
    %c0_15 = arith.constant 0 : index
    %13 = vector.load %arg3[%c0_13, %c3, %c0_14, %c0_15] : memref<1x4x2x128xf32, #tpu.memory_space<vmem>>, vector<1x1x2x128xf32>
    %14 = vector.shape_cast %13 : vector<1x1x2x128xf32> to vector<2x128xf32>
    %15 = arith.maximumf %12, %14 : vector<2x128xf32>
    %cst = arith.constant 0.000000e+00 : f32
    %16 = vector.broadcast %cst : f32 to vector<2x128xf32>
    %cst_16 = arith.constant 0.000000e+00 : f32
    %17 = vector.broadcast %cst_16 : f32 to vector<2x128xf32>
    %c4_i32 = arith.constant 4 : i32
    %18 = vector.broadcast %c4_i32 : i32 to vector<2x128xi32>
    %c0_17 = arith.constant 0 : index
    %c0_18 = arith.constant 0 : index
    %c0_19 = arith.constant 0 : index
    %c0_20 = arith.constant 0 : index
    %19 = vector.load %arg3[%c0_17, %c0_18, %c0_19, %c0_20] : memref<1x4x2x128xf32, #tpu.memory_space<vmem>>, vector<1x1x2x128xf32>
    %20 = vector.shape_cast %19 : vector<1x1x2x128xf32> to vector<2x128xf32>
    %21 = arith.subf %20, %15 : vector<2x128xf32>
    %22 = math.exp %21 : vector<2x128xf32>
    %23 = arith.addf %16, %22 : vector<2x128xf32>
    %c0_i32_21 = arith.constant 0 : i32
    %24 = vector.broadcast %c0_i32_21 : i32 to vector<2x128xi32>
    %25 = arith.cmpi eq, %4, %24 : vector<2x128xi32>
    %cst_22 = arith.constant 0.000000e+00 : f32
    %26 = vector.broadcast %cst_22 : f32 to vector<2x128xf32>
    %27 = arith.select %25, %20, %26 : vector<2x128xi1>, vector<2x128xf32>
    %28 = arith.addf %17, %27 : vector<2x128xf32>
    %29 = arith.cmpf oeq, %20, %15 : vector<2x128xf32>
    %c4_i32_23 = arith.constant 4 : i32
    %30 = vector.broadcast %c4_i32_23 : i32 to vector<2x128xi32>
    %31 = arith.cmpi eq, %18, %30 : vector<2x128xi32>
    %32 = arith.andi %29, %31 : vector<2x128xi1>
    %c0_i32_24 = arith.constant 0 : i32
    %33 = vector.broadcast %c0_i32_24 : i32 to vector<2x128xi32>
    %34 = arith.select %32, %33, %18 : vector<2x128xi1>, vector<2x128xi32>
    %c0_25 = arith.constant 0 : index
    %c1_26 = arith.constant 1 : index
    %c0_27 = arith.constant 0 : index
    %c0_28 = arith.constant 0 : index
    %35 = vector.load %arg3[%c0_25, %c1_26, %c0_27, %c0_28] : memref<1x4x2x128xf32, #tpu.memory_space<vmem>>, vector<1x1x2x128xf32>
    %36 = vector.shape_cast %35 : vector<1x1x2x128xf32> to vector<2x128xf32>
    %37 = arith.subf %36, %15 : vector<2x128xf32>
    %38 = math.exp %37 : vector<2x128xf32>
    %39 = arith.addf %23, %38 : vector<2x128xf32>
    %c1_i32 = arith.constant 1 : i32
    %40 = vector.broadcast %c1_i32 : i32 to vector<2x128xi32>
    %41 = arith.cmpi eq, %4, %40 : vector<2x128xi32>
    %cst_29 = arith.constant 0.000000e+00 : f32
    %42 = vector.broadcast %cst_29 : f32 to vector<2x128xf32>
    %43 = arith.select %41, %36, %42 : vector<2x128xi1>, vector<2x128xf32>
    %44 = arith.addf %28, %43 : vector<2x128xf32>
    %45 = arith.cmpf oeq, %36, %15 : vector<2x128xf32>
    %c4_i32_30 = arith.constant 4 : i32
    %46 = vector.broadcast %c4_i32_30 : i32 to vector<2x128xi32>
    %47 = arith.cmpi eq, %34, %46 : vector<2x128xi32>
    %48 = arith.andi %45, %47 : vector<2x128xi1>
    %c1_i32_31 = arith.constant 1 : i32
    %49 = vector.broadcast %c1_i32_31 : i32 to vector<2x128xi32>
    %50 = arith.select %48, %49, %34 : vector<2x128xi1>, vector<2x128xi32>
    %c0_32 = arith.constant 0 : index
    %c2_33 = arith.constant 2 : index
    %c0_34 = arith.constant 0 : index
    %c0_35 = arith.constant 0 : index
    %51 = vector.load %arg3[%c0_32, %c2_33, %c0_34, %c0_35] : memref<1x4x2x128xf32, #tpu.memory_space<vmem>>, vector<1x1x2x128xf32>
    %52 = vector.shape_cast %51 : vector<1x1x2x128xf32> to vector<2x128xf32>
    %53 = arith.subf %52, %15 : vector<2x128xf32>
    %54 = math.exp %53 : vector<2x128xf32>
    %55 = arith.addf %39, %54 : vector<2x128xf32>
    %c2_i32 = arith.constant 2 : i32
    %56 = vector.broadcast %c2_i32 : i32 to vector<2x128xi32>
    %57 = arith.cmpi eq, %4, %56 : vector<2x128xi32>
    %cst_36 = arith.constant 0.000000e+00 : f32
    %58 = vector.broadcast %cst_36 : f32 to vector<2x128xf32>
    %59 = arith.select %57, %52, %58 : vector<2x128xi1>, vector<2x128xf32>
    %60 = arith.addf %44, %59 : vector<2x128xf32>
    %61 = arith.cmpf oeq, %52, %15 : vector<2x128xf32>
    %c4_i32_37 = arith.constant 4 : i32
    %62 = vector.broadcast %c4_i32_37 : i32 to vector<2x128xi32>
    %63 = arith.cmpi eq, %50, %62 : vector<2x128xi32>
    %64 = arith.andi %61, %63 : vector<2x128xi1>
    %c2_i32_38 = arith.constant 2 : i32
    %65 = vector.broadcast %c2_i32_38 : i32 to vector<2x128xi32>
    %66 = arith.select %64, %65, %50 : vector<2x128xi1>, vector<2x128xi32>
    %c0_39 = arith.constant 0 : index
    %c3_40 = arith.constant 3 : index
    %c0_41 = arith.constant 0 : index
    %c0_42 = arith.constant 0 : index
    %67 = vector.load %arg3[%c0_39, %c3_40, %c0_41, %c0_42] : memref<1x4x2x128xf32, #tpu.memory_space<vmem>>, vector<1x1x2x128xf32>
    %68 = vector.shape_cast %67 : vector<1x1x2x128xf32> to vector<2x128xf32>
    %69 = arith.subf %68, %15 : vector<2x128xf32>
    %70 = math.exp %69 : vector<2x128xf32>
    %71 = arith.addf %55, %70 : vector<2x128xf32>
    %c3_i32 = arith.constant 3 : i32
    %72 = vector.broadcast %c3_i32 : i32 to vector<2x128xi32>
    %73 = arith.cmpi eq, %4, %72 : vector<2x128xi32>
    %cst_43 = arith.constant 0.000000e+00 : f32
    %74 = vector.broadcast %cst_43 : f32 to vector<2x128xf32>
    %75 = arith.select %73, %68, %74 : vector<2x128xi1>, vector<2x128xf32>
    %76 = arith.addf %60, %75 : vector<2x128xf32>
    %77 = arith.cmpf oeq, %68, %15 : vector<2x128xf32>
    %c4_i32_44 = arith.constant 4 : i32
    %78 = vector.broadcast %c4_i32_44 : i32 to vector<2x128xi32>
    %79 = arith.cmpi eq, %66, %78 : vector<2x128xi32>
    %80 = arith.andi %77, %79 : vector<2x128xi1>
    %c3_i32_45 = arith.constant 3 : i32
    %81 = vector.broadcast %c3_i32_45 : i32 to vector<2x128xi32>
    %82 = arith.select %80, %81, %66 : vector<2x128xi1>, vector<2x128xi32>
    %83 = math.log %71 : vector<2x128xf32>
    %84 = arith.addf %15, %83 : vector<2x128xf32>
    %85 = arith.subf %84, %76 : vector<2x128xf32>
    %c-100_i32 = arith.constant -100 : i32
    %86 = vector.broadcast %c-100_i32 : i32 to vector<2x128xi32>
    %87 = arith.cmpi ne, %4, %86 : vector<2x128xi32>
    %88 = arith.subi %82, %4 : vector<2x128xi32>
    %89 = math.absi %88 : vector<2x128xi32>
    %c1_i32_46 = arith.constant 1 : i32
    %90 = vector.broadcast %c1_i32_46 : i32 to vector<2x128xi32>
    %91 = arith.addi %89, %90 : vector<2x128xi32>
    %92 = arith.sitofp %91 : vector<2x128xi32> to vector<2x128xf32>
    %93 = arith.mulf %85, %92 : vector<2x128xf32>
    %cst_47 = arith.constant 0.000000e+00 : f32
    %94 = vector.broadcast %cst_47 : f32 to vector<2x128xf32>
    %95 = arith.select %87, %93, %94 : vector<2x128xi1>, vector<2x128xf32>
    %c0_48 = arith.constant 0 : index
    %c0_49 = arith.constant 0 : index
    %96 = vector.load %arg7[%c0_48, %c0_49] : memref<2x128xf32, #tpu.memory_space<vmem>>, vector<2x128xf32>
    %97 = arith.addf %96, %95 : vector<2x128xf32>
    %c0_50 = arith.constant 0 : index
    %c0_51 = arith.constant 0 : index
    %98 = vector.load %arg7[%c0_50, %c0_51] : memref<2x128xf32, #tpu.memory_space<vmem>>, vector<2x128xf32>
    tpu.vector_store %arg7[%c0_50, %c0_51], %97 {strides = array<i32>} : memref<2x128xf32, #tpu.memory_space<vmem>>, vector<2x128xf32>,
    %c0_52 = arith.constant 0 : index
    %c0_53 = arith.constant 0 : index
    %99 = vector.load %arg8[%c0_52, %c0_53] : memref<2x128xf32, #tpu.memory_space<vmem>>, vector<2x128xf32>
    %100 = arith.extui %87 : vector<2x128xi1> to vector<2x128xi32>
    %101 = arith.sitofp %100 : vector<2x128xi32> to vector<2x128xf32>
    %102 = arith.addf %99, %101 : vector<2x128xf32>
    %c0_54 = arith.constant 0 : index
    %c0_55 = arith.constant 0 : index
    %103 = vector.load %arg8[%c0_54, %c0_55] : memref<2x128xf32, #tpu.memory_space<vmem>>, vector<2x128xf32>
    tpu.vector_store %arg8[%c0_54, %c0_55], %102 {strides = array<i32>} : memref<2x128xf32, #tpu.memory_space<vmem>>, vector<2x128xf32>,
    %c0_i32_56 = arith.constant 0 : i32
    %104 = arith.cmpi eq, %arg2, %c0_i32_56 : i32
    %105 = arith.extui %104 : i1 to i32
    %c0_i32_57 = arith.constant 0 : i32
    %106 = arith.cmpi ne, %105, %c0_i32_57 : i32
    scf.if %106 {
      %c0_58 = arith.constant 0 : index
      %c0_59 = arith.constant 0 : index
      %107 = vector.load %arg7[%c0_58, %c0_59] : memref<2x128xf32, #tpu.memory_space<vmem>>, vector<2x128xf32>
      %108 = vector.shape_cast %107 : vector<2x128xf32> to vector<1x2x128xf32>
      %cst_60 = arith.constant dense<0.000000e+00> : vector<1xf32>
      %109 = vector.multi_reduction <add>, %108, %cst_60 [1, 2] : vector<1x2x128xf32> to vector<1xf32>
      %110 = vector.shape_cast %109 : vector<1xf32> to vector<1x1x1xf32>
      %111 = vector.extract %110[0, 0, 0] : f32 from vector<1x1x1xf32>
      %112 = vector.broadcast %111 : f32 to vector<1x1x1x1xf32>
      %c0_61 = arith.constant 0 : index
      %c0_62 = arith.constant 0 : index
      %c0_63 = arith.constant 0 : index
      %c0_64 = arith.constant 0 : index
      %113 = vector.load %arg5[%c0_61, %c0_62, %c0_63, %c0_64] : memref<1x1x1x1xf32, #tpu.memory_space<vmem>>, vector<1x1x1x1xf32>
      tpu.vector_store %arg5[%c0_61, %c0_62, %c0_63, %c0_64], %112 {strides = array<i32>} : memref<1x1x1x1xf32, #tpu.memory_space<vmem>>, vector<1x1x1x1xf32>,
      %c0_65 = arith.constant 0 : index
      %c0_66 = arith.constant 0 : index
      %114 = vector.load %arg8[%c0_65, %c0_66] : memref<2x128xf32, #tpu.memory_space<vmem>>, vector<2x128xf32>
      %115 = vector.shape_cast %114 : vector<2x128xf32> to vector<1x2x128xf32>
      %cst_67 = arith.constant dense<0.000000e+00> : vector<1xf32>
      %116 = vector.multi_reduction <add>, %115, %cst_67 [1, 2] : vector<1x2x128xf32> to vector<1xf32>
      %117 = vector.shape_cast %116 : vector<1xf32> to vector<1x1x1xf32>
      %118 = vector.extract %117[0, 0, 0] : f32 from vector<1x1x1xf32>
      %119 = vector.broadcast %118 : f32 to vector<1x1x1x1xf32>
      %c0_68 = arith.constant 0 : index
      %c0_69 = arith.constant 0 : index
      %c0_70 = arith.constant 0 : index
      %c0_71 = arith.constant 0 : index
      %120 = vector.load %arg6[%c0_68, %c0_69, %c0_70, %c0_71] : memref<1x1x1x1xf32, #tpu.memory_space<vmem>>, vector<1x1x1x1xf32>
      tpu.vector_store %arg6[%c0_68, %c0_69, %c0_70, %c0_71], %119 {strides = array<i32>} : memref<1x1x1x1xf32, #tpu.memory_space<vmem>>, vector<1x1x1x1xf32>,
    } else {
    }
    return
  }
  func.func @transform_0(%arg0: i32, %arg1: i32, %arg2: i32) -> (i32, i32, i32, i32) {
    %c1_i32 = arith.constant 1 : i32
    %0 = arith.muli %arg1, %c1_i32 : i32
    %1 = arith.addi %0, %arg2 : i32
    %c0_i32 = arith.constant 0 : i32
    %c0_i32_0 = arith.constant 0 : i32
    %c0_i32_1 = arith.constant 0 : i32
    return %arg0, %c0_i32, %1, %c0_i32_0 : i32, i32, i32, i32
  }
  func.func @transform_1(%arg0: i32, %arg1: i32, %arg2: i32) -> (i32, i32, i32) {
    %c1_i32 = arith.constant 1 : i32
    %0 = arith.muli %arg1, %c1_i32 : i32
    %1 = arith.addi %0, %arg2 : i32
    %c0_i32 = arith.constant 0 : i32
    %c0_i32_0 = arith.constant 0 : i32
    return %arg0, %1, %c0_i32 : i32, i32, i32
  }
  func.func @transform_2(%arg0: i32, %arg1: i32, %arg2: i32) -> (i32, i32, i32, i32) {
    %c0_i32 = arith.constant 0 : i32
    %c0_i32_0 = arith.constant 0 : i32
    %c0_i32_1 = arith.constant 0 : i32
    return %arg0, %arg1, %c0_i32, %c0_i32_0 : i32, i32, i32, i32
  }
  func.func @transform_3(%arg0: i32, %arg1: i32, %arg2: i32) -> (i32, i32, i32, i32) {
    %c0_i32 = arith.constant 0 : i32
    %c0_i32_0 = arith.constant 0 : i32
    %c0_i32_1 = arith.constant 0 : i32
    return %arg0, %arg1, %c0_i32, %c0_i32_0 : i32, i32, i32, i32
  }
}

</mosaic_0001>

<bundles_post_ra>
// kernel: tpu_custom_call.1
= control target key start
LH: loop header
LB: loop body
LE: loop exit
PB: predicated region body
PF: predicated region fallthrough
CT: control target
= control target key end

     0   :  { %9 = vsyncpa [#allocation5], 0  ;;  %s889_s0 = inlined_call_operand.hbm [shape: f32[2,4,2,128], index: 0, kind: input, shape index: {}]   ;;  %s890_s1 = inlined_call_operand.hbm [shape: s32[2,2,128], index: 1, kind: input, shape index: {}]   ;;  %s891_s2 = inlined_call_operand.vmem [shape: f32[2,1,1,1], index: 2, kind: output, shape index: {0}]   ;;  %s892_s3 = inlined_call_operand.vmem [shape: f32[2,1,1,1], index: 3, kind: output, shape index: {1}]  }
   0x1   :  { %11 = vsyncpa [#allocation5 + $0x1], 0 }
   0x2   :  { %12 = vsyncpa [#allocation7], 0 }
   0x3   :  { %14 = vsyncpa [#allocation7 + $0x1], 0  ;;  %s777_s12 = smov 0   ;;  %s779_s13 = smov 0  }
   0x4   :  { %s781_s14 = smov 0   ;;  %s783_s15 = smov 0  }
   0x5   :  { %s785_s16 = smov 0   ;;  %s787_s17 = smov 0  }
   0x6 LB: > { %s540_s18 = sadd.s32 4294967295, %s751_s17   ;;  %s39_s19 = sadd.s32 1, %s747_s16  ;;  %s751_s17 = sphi %s787_s17, %s20_s17   ;;  %s747_s16 = sphi %s785_s16, %s900_s16   ;;  %s743_s15 = sphi %s783_s15, %s899_s15   ;;  %s739_s14 = sphi %s781_s14, %s898_s14   ;;  %s735_s13 = sphi %s779_s13, %s897_s13   ;;  %s731_s12 = sphi %s777_s12, %s896_s12  }
   0x7   : > { %p41_p0 = scmp.ge.s32.totalorder %s39_s19, 2  ;;  %s50_s20 = sadd.s32 1, %s739_s14 }
   0x8   : > { %p57_p1 = scmp.ne.s32.totalorder %s739_s14, %s735_s13  ;;  %p58_p2 = scmp.eq.s32.totalorder %s751_s17, 0 }
   0x9   : > { %s902_s19 = smov (%p41_p0, %s39_s19), 0  ;;  %p63_p4 = scmp.ne.s32.totalorder %s735_s13, %s731_s12 }
   0xa   : > { %p813_p3 = por %p58_p2, %p57_p1  ;;  %s45_s22 = ssub.s32 %s747_s16, %s902_s19 }
   0xb   : > { %p64_p5 = scmp.eq.s32.totalorder %s540_s18, 0  ;;  %p48_p6 = scmp.eq.s32.totalorder %s45_s22, 0 }
   0xc   : > { %p574_p8 = scmp.lt.s32.totalorder %s751_s17, 2  ;;  %s173_s25 = sand.u32 1, %s739_s14  }
   0xd   : > { %p820_p7 = por %p64_p5, %p63_p4  ;;  %s558_s26 = sshll.u32 %s747_s16, 3 }
   0xe   : > { %s826_s24 = scalar_select %p48_p6, %s739_s14, %s50_s20  }
   0xf   : > { %s544_s27 = sshll.u32 %s173_s25, 3  ;;  %s184_s30 = scalar_lea.hbm %s889_s0, %s558_s26 }
  0x10   : > { %s185_s4 = sshll.u32 %s184_s30, 4  ;;  %s177_s5 = scalar_lea.vmem [#allocation4], %s544_s27  ;;  %s186_s4 = int_to_ptr.hbm [resolvable:$true] %s185_s4 }
  0x11   : > { %s187_s6 = sshll.u32 %s177_s5, 4  ;;  %p835_p9 = pnand %p574_p8, %p813_p3  ;;  %s188_s6 = int_to_ptr.vmem [resolvable:$true] %s187_s6 }
  0x12   : > { %p549_p10 = scmp.ge.s32.totalorder %s751_s17, 1  ;;  %p216_p11 = scmp.lt.s32.totalorder %s751_s17, 3 }
  0x13   : > { %s174_s8 = scalar_lea.sflag [#allocation5], %s173_s25  ;;  %s753_s9 = smov 32  }
  0x14   : > { %s754_s10 = smov 2   ;;  %p217_p12 = pnand %p549_p10, %p216_p11 }
  0x15   : > { %570 = dma.hbm_to_vmem [thread:$0]  (!%p835_p9), %s186_s4, 128, %s188_s6, %s174_s8, %s753_s9, %s753_s9, %s754_s10  }
  0x16   : > { %s547_s11 = sshll.u32 %s173_s25, 1  ;;  %s548_s12 = sshll.u32 %s747_s16, 1 }
  0x17   : > { %s207_s21 = scalar_lea.hbm %s890_s1, %s548_s12  ;;  %s201_s26 = scalar_lea.vmem [#allocation6], %s547_s11 }
  0x18   : > { %s209_s22 = sshll.u32 %s207_s21, 4  ;;  %s211_s27 = sshll.u32 %s201_s26, 4  ;;  %s210_s22 = int_to_ptr.hbm [resolvable:$true] %s209_s22  ;;  %s212_s27 = int_to_ptr.vmem [resolvable:$true] %s211_s27 }
  0x19   : > { %s198_s28 = scalar_lea.sflag [#allocation7], %s173_s25  ;;  %220 = sbr.rel (%p217_p12) target bundleno = 274 (0x112), region = 28 }
  0x1a   : > { %573 = dma.hbm_to_vmem [thread:$0]  (!%p835_p9), %s210_s22, 32, %s212_s27, %s198_s28  }
  0x1b   : > { %s222_s29 = sand.u32 (!%p217_p12), 1, %s735_s13  }
  0x1c   : > { %s550_s30 = sshll.u32 (!%p217_p12), %s222_s29, 3  ;;  %s223_s4 = scalar_lea.sflag (!%p217_p12), [#allocation5], %s222_s29 }
  0x1d   : > { %s226_s5 = scalar_lea.vmem (!%p217_p12), [#allocation4], %s550_s30 }
  0x1e   : > { %722 = dma.done.wait (%p820_p7), %s223_s4, 128  }
  0x1f   : > { %724 = vsyncadd (%p820_p7), %s223_s4, 4294967168  ;;  %s551_s6 = sshll.u32 %s222_s29, 1  ;;  %s233_s8 = scalar_lea.sflag [#allocation7], %s222_s29 }
  0x20   : > { %s854_s9 = scalar_lea.vmem [#allocation6], %s551_s6 }
  0x21   : > { %726 = dma.done.wait (%p820_p7), %s233_s8, 32  }
  0x22   : > { %728 = vsyncadd (%p820_p7), %s233_s8, 4294967264  ;;  %v755_v0 = vmov 0.0   ;;  %v293_v1 = vld [vmem:[%s226_s5] sm:$0x3]  ;;  %v552_v2 = vld [vmem:[%s226_s5 + $0x2] sm:$0x3] }
  0x23   : > { %290 = vst [vmem:[#allocation2] sm:$0x3] %v755_v0  ;;  %v296_v3 = vmax.f32 %v293_v1, %v552_v2  ;;  %v553_v4 = vld [vmem:[%s226_s5 + $0x4] sm:$0x3]  ;;  %v554_v5 = vld [vmem:[%s226_s5 + $0x6] sm:$0x3] }
  0x24   : > { %291 = vst [vmem:[#allocation3] sm:$0x3] %v755_v0  ;;  %v756_v10 = vmov 4   ;;  %v292_v19 = vld [vmem:[%s854_s9] sm:$0x3]  ;;  %p274_p13 = scmp.lt.s32.totalorder %s743_s15, 1 }
  0x25   : > { %v299_v6 = vmax.f32 %v296_v3, %v553_v4  ;;  %vm349_vm9 = vcmp.ne.s32.totalorder %v292_v19, 4294967196  ;;  %vm307_vm11 = vcmp.eq.s32.totalorder %v292_v19, 0  ;;  %vm316_vm12 = vcmp.eq.s32.totalorder %v292_v19, 1 }
  0x26   : > { %v555_v22 = vsel %vm349_vm9, 1.0, %v755_v0  ;;  %v308_v31 = vsel %vm307_vm11, %v293_v1, 0.0  ;;  %v317_v32 = vsel %vm316_vm12, %v552_v2, 0.0  ;;  %vm327_vm13 = vcmp.eq.s32.totalorder %v292_v19, 2  ;;  %s904_s15 = smov (!%p274_p13, %s743_s15), 1 }
  0x27   : > { %v302_v7 = vmax.f32 %v299_v6, %v554_v5  ;;  %v318_v36 = vadd.f32 %v317_v32, %v308_v31  ;;  %v328_v37 = vsel %vm327_vm13, %v553_v4, 0.0  ;;  %vm338_vm15 = vcmp.eq.s32.totalorder %v292_v19, 3  ;;  %s279_s7 = scalar_lea.vmem %s891_s2, %s904_s15  ;;  %s285_s18 = scalar_lea.vmem %s892_s3, %s904_s15 }
  0x28   : > { %v339_v40 = vsel %vm338_vm15, %v554_v5, 0.0 }
  0x29   : > { %v303_v8 = vsub.f32 %v293_v1, %v302_v7  ;;  %vm310_vm0 = vcmp.eq.f32.partialorder %v293_v1, %v302_v7  ;;  %v312_v9 = vsub.f32 %v552_v2, %v302_v7  ;;  %vm319_vm1 = vcmp.eq.f32.partialorder %v552_v2, %v302_v7 }
  0x2a   : > { %v311_v11 = vsel %vm310_vm0, 0, %v756_v10  ;;  %v323_v12 = vsub.f32 %v553_v4, %v302_v7  ;;  %v334_v13 = vsub.f32 %v554_v5, %v302_v7  ;;  %vm330_vm4 = vcmp.eq.f32.partialorder %v553_v4, %v302_v7  ;;  %v358_v49 = vld [vmem:[#allocation2] sm:$0x3] }
  0x2b   : > { %v304_v14 = vmul.f32 1.442695, %v303_v8  ;;  %v313_v15 = vmul.f32 1.442695, %v312_v9  ;;  %vm320_vm2 = vcmp.eq.s32.totalorder %v311_v11, 4  ;;  %vm341_vm7 = vcmp.eq.f32.partialorder %v554_v5, %v302_v7 }
  0x2c   : > { %vm321_vm3 = vmand %vm319_vm1, %vm320_vm2  ;;  %v324_v16 = vmul.f32 1.442695, %v323_v12  ;;  %v335_v17 = vmul.f32 1.442695, %v334_v13  ;;  %v361_v21 = vld [vmem:[#allocation3] sm:$0x3]  ;;  %v329_v39 = vadd.f32 %v328_v37, %v318_v36 }
  0x2d   : > { %627 = vpow2.f32 %v304_v14  ;;  %v322_v18 = vsel %vm321_vm3, 1, %v311_v11  ;;  %v364_v25 = vadd.f32 %v555_v22, %v361_v21  ;;  %vm370_vm0 = vcmask 1041408  }
  0x2e   : > { %629 = vpow2.f32 %v313_v15  ;;  %vm331_vm5 = vcmp.eq.s32.totalorder %v322_v18, 4  ;;  %v340_v43 = vadd.f32 %v339_v40, %v329_v39  ;;  %vm382_vm1 = vcmask 0  }
  0x2f   : > { %631 = vpow2.f32 %v324_v16  ;;  %vm332_vm6 = vmand %vm330_vm4, %vm331_vm5  ;;  %365 = vst [vmem:[#allocation3] sm:$0x3] %v364_v25 }
  0x30   : > { %v333_v20 = vsel %vm332_vm6, 2, %v322_v18  ;;  %633 = vpow2.f32 %v335_v17 }
  0x31   : > { %vm342_vm8 = vcmp.eq.s32.totalorder %v333_v20, 4 }
  0x32   : > { %vm343_vm10 = vmand %vm341_vm7, %vm342_vm8 }
  0x33   : > { %v628_v23 = vpop.eup %627  ;;  %v344_v24 = vsel %vm343_vm10, 3, %v333_v20 }
  0x34   : > { %v630_v26 = vpop.eup %629  ;;  %v350_v29 = vsub.s32 %v344_v24, %v292_v19 }
  0x35   : > { %v632_v27 = vpop.eup %631  ;;  %v315_v28 = vadd.f32 %v630_v26, %v628_v23 }
  0x36   : > { %v634_v30 = vpop.eup %633  ;;  %v352_v35 = vsub.s32 0, %v350_v29  ;;  %vm351_vm14 = vcmp.lt.s32.totalorder %v350_v29, 0  ;;  %v384_v54 = vld [vmem:[#allocation3] sm:$0x3] }
  0x37   : > { %v326_v33 = vadd.f32 %v632_v27, %v315_v28  ;;  %v385_v55 = vsel %vm370_vm0, %v384_v54, 0.0 }
  0x38   : > { %v353_v38 = vsel %vm351_vm14, %v352_v35, %v350_v29 }
  0x39   : > { %v337_v34 = vadd.f32 %v634_v30, %v326_v33  ;;  %v354_v41 = vadd.s32 1, %v353_v38 }
  0x3b   : > { %635 = vlog2.f32 %v337_v34  ;;  %v355_v46 = vcvt.s32.f32 %v354_v41 }
  0x41   : > { %v636_v42 = vpop.eup %635 }
  0x42   : > { %v346_v44 = vmul.f32 0.6931472, %v636_v42 }
  0x44   : > { %v347_v45 = vadd.f32 %v346_v44, %v302_v7 }
  0x46   : > { %v348_v47 = vsub.f32 %v347_v45, %v340_v43 }
  0x48   : > { %v356_v48 = vmul.f32 %v355_v46, %v348_v47 }
  0x4a   : > { %v357_v50 = vsel %vm349_vm9, %v356_v48, 0.0 }
  0x4b   : > { %v359_v51 = vadd.f32 %v358_v49, %v357_v50 }
  0x4d   : > { %360 = vst [vmem:[#allocation2] sm:$0x3] %v359_v51 }
  0x54   : > { %v369_v52 = vld [vmem:[#allocation2] sm:$0x3] }
  0x55   : > { %v371_v53 = vsel %vm370_vm0, %v369_v52, 0.0 }
  0x56   : > { %372 = vadd.xlane.f32.xlu0 %v371_v53 }
  0x5e   : > { %386 = vadd.xlane.f32.xlu0 %v385_v55 }
  0xc9   : > { %v373_v56 = vpop.xlane.xlu0 %372 }
  0xca   : > { %v374_v57 = vrot.slane %v373_v56, 4 }
  0xcc   : > { %v375_v58 = vadd.f32 %v374_v57, %v373_v56 }
  0xce   : > { %v376_v59 = vrot.slane %v375_v58, 2 }
  0xd0   : > { %v377_v60 = vadd.f32 %v376_v59, %v375_v58 }
  0xd1   : > { %v387_v61 = vpop.xlane.xlu0 %386 }
  0xd2   : > { %v388_v62 = vrot.slane %v387_v61, 4  ;;  %v378_v63 = vrot.slane %v377_v60, 1 }
  0xd4   : > { %v389_v0 = vadd.f32 %v388_v62, %v387_v61  ;;  %v379_v1 = vadd.f32 %v378_v63, %v377_v60 }
  0xd6   : > { %v390_v2 = vrot.slane %v389_v0, 2  ;;  %559 = vpush %v379_v1 }
  0xd8   : > { %v391_v3 = vadd.f32 %v390_v2, %v389_v0 }
  0xda   : > { %v392_v4 = vrot.slane %v391_v3, 1 }
  0xdc   : > { %v393_v5 = vadd.f32 %v392_v4, %v391_v3 }
  0xde   : > { %561 = vpush %v393_v5 }
 0x107   : > { %s560_s10 = spop %559 }
 0x108   : > { %v381_v6 = vstv %s560_s10 }
 0x109   : > { %383 = vst.msk [vmem:[%s279_s7] sm:$0x1] %vm382_vm1, %v381_v6 }
 0x10f   : > { %s562_s20 = spop %561 }
 0x110   : > { %v395_v7 = vstv %s562_s20 }
 0x111   : > { %396 = vst.msk [vmem:[%s285_s18] sm:$0x1] %vm382_vm1, %v395_v7 }
 0x112 PF: > { %s20_s17 = sadd.s32 1, %s751_s17   ;;  %s896_s12 = smov %s735_s13 }
 0x113   : > { %p17_p0 = scmp.ge.s32.totalorder %s20_s17, 4   ;;  %s897_s13 = smov %s739_s14 }
 0x114   : > { %s898_s14 = smov %s826_s24  ;;  %s899_s15 = smov %s747_s16 }
 0x115   : > { %s900_s16 = smov %s902_s19  ;;  %19 = sbr.rel (!%p17_p0) target bundleno = 6 (0x6), region = 104 }
 0x11a   :  { %438 = vsyncpa [#allocation5], 1 }
 0x11b   :  { %440 = vsyncpa [#allocation5 + $0x1], 1 }
 0x11c   :  { %441 = vsyncpa [#allocation7], 1 }
 0x11d   :  { %443 = vsyncpa [#allocation7 + $0x1], 1 }

</bundles_post_ra>
